<compile_context>
chip_gen: v7x
topology: tpu7x:2x2x1
jax: 0.10.0
libtpu: 0.0.40
codegen_flags: <defaults>
</compile_context>

<pallas_src>
import jax
import jax.numpy as jnp
from jax import lax
from jax.experimental import pallas as pl
from jax.experimental.pallas import tpu as pltpu

_LANE = 128


def _round_up(x, m):
    return (x + m - 1) // m * m


def _make_mlp_kernel(num_hidden_layers: int, matmul_dtype):
    """Kernel ref order:
        x_tile,
        wT_0, b_0, ..., wT_{L-1}, b_{L-1},   (hidden layers, transposed weights)
        w_head, b_head,
        o_ref
    Shapes inside the kernel (one grid step):
        x_tile:  (TB, D_pad)        row-major input tile (stream dtype)
        wT_l:    (H_pad, in_pad_l)  already cast to matmul_dtype
        b_l:     (H_pad, 1)         f32, broadcasts over the TB lanes
        w_head:  (H_pad, 1)         f32
        b_head:  (1, 1)             f32
        o_ref:   (1, TB)            lane-dense sigmoid output (f32)
    """
    L = num_hidden_layers
    # Contract the last dim of both operands: (H_pad, K) x (TB, K) -> (H_pad, TB).
    contract_last = (((1,), (1,)), ((), ()))

    def kernel(*refs):
        x_ref = refs[0]
        o_ref = refs[-1]
        params = refs[1:-1]

        # ---- Layer 0: consume the row-major x tile directly (no wrapper
        # transpose); result is feature-major (H_pad, TB) f32.
        w0 = params[0][...]                                   # (H_pad, D_pad)
        b0 = params[1][...]                                   # (H_pad, 1)
        h = lax.dot_general(w0, x_ref[...],
                            dimension_numbers=contract_last,
                            preferred_element_type=jnp.float32)
        h = jnp.maximum(h + b0, 0.0)

        # ---- Remaining hidden layers: full MXU matmul + f32 bias/ReLU (VPU).
        for l in range(1, L):
            wT = params[2 * l][...]                           # (H_pad, H_pad)
            b = params[2 * l + 1][...]                        # (H_pad, 1)
            h = jnp.dot(wT, h.astype(matmul_dtype),
                        preferred_element_type=jnp.float32)   # (H_pad, TB) f32
            h = jnp.maximum(h + b, 0.0)

        # ---- Head (out_features == 1): VPU multiply + cross-sublane reduce
        # (XLU) instead of a 1-column MXU pass.  Result is lane-dense (1, TB).
        w_head = params[-2][...]                              # (H_pad, 1) f32
        b_head = params[-1][...]                              # (1, 1) f32
        z = jnp.sum(h * w_head, axis=0, keepdims=True) + b_head

        # Exact sigmoid: exp on the EUP; the divide on a single (1, TB) row is
        # negligible and keeps parity with torch.sigmoid.
        o_ref[...] = (1.0 / (1.0 + jnp.exp(-z))).astype(o_ref.dtype)

    return kernel


def feed_forward_nn(x, weights, biases, *, matmul_dtype=jnp.float32, tb_max=2048):
    """Runs the fused MLP Pallas kernel.

    Args:
      x:       (B, input_dim) float32, row-major (same as nn.Linear input).
      weights: list of (in, out) float32 matrices; last one has out == 1.
      biases:  list of (out,) float32 vectors.
      matmul_dtype: jnp.float32 or jnp.bfloat16.  With bf16, x is streamed and
        the MXU operands are bf16; accumulation and elementwise math stay f32.
      tb_max:  max batch-tile width (lanes per grid step), 128-aligned.
    Returns:
      (B, 1) float32 sigmoid outputs.
    """
    assert len(weights) == len(biases)
    L = len(weights) - 1
    assert L >= 1
    B, D = x.shape
    H = weights[0].shape[1]

    matmul_dtype = jnp.dtype(matmul_dtype)
    stream_dtype = matmul_dtype if matmul_dtype == jnp.bfloat16 else jnp.dtype(jnp.float32)
    stream_itemsize = stream_dtype.itemsize
    sub = 16 if matmul_dtype == jnp.bfloat16 else 8

    # Feature dims padded only to sublane granularity (lane alignment is only
    # needed on the batch-tile dim, which is 128-aligned below).
    D_pad = _round_up(max(D, 1), sub)
    H_pad = _round_up(max(H, 1), sub)

    # Batch tiling: 128-aligned tiles; >= 2 grid steps whenever B allows it so
    # the "parallel" grid axis can use both v7x TensorCores; capped by tb_max
    # and by a VMEM budget for the double-buffered x tile.
    tb_cap = max(_LANE, (tb_max // _LANE) * _LANE)
    tb_target = min(tb_cap, _round_up(pl.cdiv(B, 2), _LANE))
    x_tile_budget = 24 * 1024 * 1024
    tb_fit = max(_LANE,
                 ((x_tile_budget // (2 * D_pad * stream_itemsize)) // _LANE) * _LANE)
    TB = min(tb_target, tb_fit)
    B_pad = _round_up(B, TB)
    grid = (B_pad // TB,)

    # Cheap wrapper-side prep: cast (for bf16 streaming) + zero-pad only when
    # needed.  No transpose pass over x.
    x_p = x.astype(stream_dtype)
    if (B_pad, D_pad) != (B, D):
        x_p = jnp.pad(x_p, ((0, B_pad - B), (0, D_pad - D)))

    flat_params = []
    in_specs = [pl.BlockSpec((TB, D_pad), lambda i: (i, 0))]     # x tile

    for l in range(L):
        w = weights[l]                                           # (in_l, H)
        b = jnp.reshape(biases[l], (-1,))                        # (H,)
        in_l = w.shape[0]
        in_pad = D_pad if l == 0 else H_pad
        wT = jnp.zeros((H_pad, in_pad), jnp.float32).at[:H, :in_l].set(w.T)
        bcol = jnp.zeros((H_pad, 1), jnp.float32).at[:H, 0].set(b)
        flat_params += [wT.astype(matmul_dtype), bcol]
        in_specs += [pl.BlockSpec((H_pad, in_pad), lambda i: (0, 0)),
                     pl.BlockSpec((H_pad, 1), lambda i: (0, 0))]

    w_out = jnp.reshape(weights[-1], (-1,))                      # (H,)
    b_out = jnp.reshape(biases[-1], (1, 1)).astype(jnp.float32)  # (1, 1)
    w_head = jnp.zeros((H_pad, 1), jnp.float32).at[:H, 0].set(w_out)
    flat_params += [w_head, b_out]
    in_specs += [pl.BlockSpec((H_pad, 1), lambda i: (0, 0)),
                 pl.BlockSpec((1, 1), lambda i: (0, 0))]

    out_spec = pl.BlockSpec((1, TB), lambda i: (0, i))           # lane-dense row

    param_bytes = sum(int(p.size) * p.dtype.itemsize for p in flat_params)
    flops = 2 * B_pad * (D_pad * H_pad + (L - 1) * H_pad * H_pad + H_pad)
    bytes_accessed = int(x_p.size) * stream_itemsize + param_bytes + B_pad * 4
    cost = pl.CostEstimate(flops=int(flops), transcendentals=int(B_pad),
                           bytes_accessed=int(bytes_accessed))

    # VMEM: double-buffered x tile + output row, resident params (counted 2x),
    # and f32 activation temps; clamp to a limit that is safe on v5e/v6e/v7x.
    vmem_est = (2 * TB * D_pad * stream_itemsize + 2 * TB * 4
                + 2 * param_bytes + 6 * H_pad * TB * 4)
    vmem_limit = int(min(max(2 * vmem_est, 32 * 1024 * 1024), 64 * 1024 * 1024))

    kernel = _make_mlp_kernel(L, matmul_dtype)
    out_row = pl.pallas_call(
        kernel,
        out_shape=jax.ShapeDtypeStruct((1, B_pad), jnp.float32),
        grid=grid,
        in_specs=in_specs,
        out_specs=out_spec,
        compiler_params=pltpu.CompilerParams(
            dimension_semantics=("parallel",),
            vmem_limit_bytes=vmem_limit),
        cost_estimate=cost,
    )(x_p, *flat_params)

    return out_row[0, :B].reshape(B, 1)


def init_params(key, input_dim, hidden_dim, hidden_layers):
    """Deterministic PyTorch-Linear-style init (uniform +-1/sqrt(fan_in))."""
    dims_in = [input_dim] + [hidden_dim] * hidden_layers
    dims_out = [hidden_dim] * hidden_layers + [1]
    weights, biases = [], []
    for d_in, d_out in zip(dims_in, dims_out):
        key, kw, kb = jax.random.split(key, 3)
        bound = 1.0 / jnp.sqrt(jnp.float32(d_in))
        w = jax.random.uniform(kw, (d_in, d_out), jnp.float32, -bound, bound)
        b = jax.random.uniform(kb, (d_out,), jnp.float32, -bound, bound)
        weights.append(w)
        biases.append(b)
    return weights, biases


def reference_mlp(x, weights, biases):
    h = x
    for w, b in zip(weights[:-1], biases[:-1]):
        h = jnp.maximum(h @ w + b, 0.0)
    z = h @ weights[-1] + biases[-1]
    return jax.nn.sigmoid(z)


if __name__ == "__main__":
    # Small shapes consistent with the module: batch=8, input_dim=32,
    # hidden_dim=64, hidden_layers=3, batch_norm=False (default path).
    batch, input_dim, hidden_dim, hidden_layers = 8, 32, 64, 3

    key = jax.random.PRNGKey(0)
    key, kx = jax.random.split(key)
    x = jax.random.normal(kx, (batch, input_dim), jnp.float32)
    weights, biases = init_params(key, input_dim, hidden_dim, hidden_layers)

    ref = reference_mlp(x, weights, biases)

    # f32 MXU-operand path.
    out_f32 = jax.block_until_ready(feed_forward_nn(x, weights, biases))
    assert out_f32.shape == (batch, 1)
    assert jnp.allclose(out_f32, ref, atol=2e-3, rtol=2e-3), \
        float(jnp.max(jnp.abs(out_f32 - ref)))

    # bf16 stream/MXU-operand path (bandwidth option), f32 accumulation.
    out_bf16 = jax.block_until_ready(
        feed_forward_nn(x, weights, biases, matmul_dtype=jnp.bfloat16))
    assert out_bf16.shape == (batch, 1)
    assert jnp.allclose(out_bf16, ref, atol=3e-2, rtol=3e-2), \
        float(jnp.max(jnp.abs(out_bf16 - ref)))

    print("KERNEL_OK")
</pallas_src>

<mosaic_0001>
module attributes {stable_mosaic.version = 11 : i64} {
  func.func @kernel(%arg0: i32, %arg1: memref<128x32xf32, #tpu.memory_space<vmem>>, %arg2: memref<64x32xf32, #tpu.memory_space<vmem>>, %arg3: memref<64x1xf32, #tpu.memory_space<vmem>>, %arg4: memref<64x64xf32, #tpu.memory_space<vmem>>, %arg5: memref<64x1xf32, #tpu.memory_space<vmem>>, %arg6: memref<64x64xf32, #tpu.memory_space<vmem>>, %arg7: memref<64x1xf32, #tpu.memory_space<vmem>>, %arg8: memref<64x1xf32, #tpu.memory_space<vmem>>, %arg9: memref<1x1xf32, #tpu.memory_space<vmem>>, %arg10: memref<1x128xf32, #tpu.memory_space<vmem>>) attributes {dimension_semantics = [#tpu.dimension_semantics<parallel>], iteration_bounds = array<i64: 1>, scalar_prefetch = 0 : i64, scratch_operands = 0 : i64, tpu.core_type = #tpu.core_type<tc>, window_params = [{transform_indices = @transform_0, window_bounds = array<i64: 128, 32>}, {pipeline_mode = #tpu.pipeline_mode<synchronous>, transform_indices = @transform_1, window_bounds = array<i64: 64, 32>}, {pipeline_mode = #tpu.pipeline_mode<synchronous>, transform_indices = @transform_2, window_bounds = array<i64: 64, 1>}, {pipeline_mode = #tpu.pipeline_mode<synchronous>, transform_indices = @transform_3, window_bounds = array<i64: 64, 64>}, {pipeline_mode = #tpu.pipeline_mode<synchronous>, transform_indices = @transform_4, window_bounds = array<i64: 64, 1>}, {pipeline_mode = #tpu.pipeline_mode<synchronous>, transform_indices = @transform_5, window_bounds = array<i64: 64, 64>}, {pipeline_mode = #tpu.pipeline_mode<synchronous>, transform_indices = @transform_6, window_bounds = array<i64: 64, 1>}, {pipeline_mode = #tpu.pipeline_mode<synchronous>, transform_indices = @transform_7, window_bounds = array<i64: 64, 1>}, {pipeline_mode = #tpu.pipeline_mode<synchronous>, transform_indices = @transform_8, window_bounds = array<i64: 1, 1>}, {transform_indices = @transform_9, window_bounds = array<i64: 1, 128>}]} {
    %c0 = arith.constant 0 : index
    %c0_0 = arith.constant 0 : index
    %0 = vector.load %arg2[%c0, %c0_0] : memref<64x32xf32, #tpu.memory_space<vmem>>, vector<64x32xf32>
    %c0_1 = arith.constant 0 : index
    %c0_2 = arith.constant 0 : index
    %1 = vector.load %arg3[%c0_1, %c0_2] : memref<64x1xf32, #tpu.memory_space<vmem>>, vector<64x1xf32>
    %c0_3 = arith.constant 0 : index
    %c0_4 = arith.constant 0 : index
    %2 = vector.load %arg1[%c0_3, %c0_4] : memref<128x32xf32, #tpu.memory_space<vmem>>, vector<128x32xf32>
    %cst = arith.constant dense<0.000000e+00> : vector<64x128xf32>
    %3 = tpu.matmul %0, %2, %cst {dimension_numbers = #tpu.dot_dimension_numbers<[1], [1], [0], [0], [0, 0, 1, 0], [], []>} : vector<64x32xf32>, vector<128x32xf32>, vector<64x128xf32> -> vector<64x128xf32>
    %4 = vector.broadcast %1 : vector<64x1xf32> to vector<64x128xf32>
    %5 = arith.addf %3, %4 : vector<64x128xf32>
    %cst_5 = arith.constant 0.000000e+00 : f32
    %6 = vector.broadcast %cst_5 : f32 to vector<64x128xf32>
    %7 = arith.maximumf %5, %6 : vector<64x128xf32>
    %c0_6 = arith.constant 0 : index
    %c0_7 = arith.constant 0 : index
    %8 = vector.load %arg4[%c0_6, %c0_7] : memref<64x64xf32, #tpu.memory_space<vmem>>, vector<64x64xf32>
    %c0_8 = arith.constant 0 : index
    %c0_9 = arith.constant 0 : index
    %9 = vector.load %arg5[%c0_8, %c0_9] : memref<64x1xf32, #tpu.memory_space<vmem>>, vector<64x1xf32>
    %cst_10 = arith.constant dense<0.000000e+00> : vector<64x128xf32>
    %10 = tpu.matmul %8, %7, %cst_10 {dimension_numbers = #tpu.dot_dimension_numbers<[1], [0], [0], [1], [0, 0, 1, 1], [], []>} : vector<64x64xf32>, vector<64x128xf32>, vector<64x128xf32> -> vector<64x128xf32>
    %11 = vector.broadcast %9 : vector<64x1xf32> to vector<64x128xf32>
    %12 = arith.addf %10, %11 : vector<64x128xf32>
    %cst_11 = arith.constant 0.000000e+00 : f32
    %13 = vector.broadcast %cst_11 : f32 to vector<64x128xf32>
    %14 = arith.maximumf %12, %13 : vector<64x128xf32>
    %c0_12 = arith.constant 0 : index
    %c0_13 = arith.constant 0 : index
    %15 = vector.load %arg6[%c0_12, %c0_13] : memref<64x64xf32, #tpu.memory_space<vmem>>, vector<64x64xf32>
    %c0_14 = arith.constant 0 : index
    %c0_15 = arith.constant 0 : index
    %16 = vector.load %arg7[%c0_14, %c0_15] : memref<64x1xf32, #tpu.memory_space<vmem>>, vector<64x1xf32>
    %cst_16 = arith.constant dense<0.000000e+00> : vector<64x128xf32>
    %17 = tpu.matmul %15, %14, %cst_16 {dimension_numbers = #tpu.dot_dimension_numbers<[1], [0], [0], [1], [0, 0, 1, 1], [], []>} : vector<64x64xf32>, vector<64x128xf32>, vector<64x128xf32> -> vector<64x128xf32>
    %18 = vector.broadcast %16 : vector<64x1xf32> to vector<64x128xf32>
    %19 = arith.addf %17, %18 : vector<64x128xf32>
    %cst_17 = arith.constant 0.000000e+00 : f32
    %20 = vector.broadcast %cst_17 : f32 to vector<64x128xf32>
    %21 = arith.maximumf %19, %20 : vector<64x128xf32>
    %c0_18 = arith.constant 0 : index
    %c0_19 = arith.constant 0 : index
    %22 = vector.load %arg8[%c0_18, %c0_19] : memref<64x1xf32, #tpu.memory_space<vmem>>, vector<64x1xf32>
    %c0_20 = arith.constant 0 : index
    %c0_21 = arith.constant 0 : index
    %23 = vector.load %arg9[%c0_20, %c0_21] : memref<1x1xf32, #tpu.memory_space<vmem>>, vector<1x1xf32>
    %24 = vector.broadcast %22 : vector<64x1xf32> to vector<64x128xf32>
    %25 = arith.mulf %21, %24 : vector<64x128xf32>
    %cst_22 = arith.constant dense<0.000000e+00> : vector<128xf32>
    %26 = vector.multi_reduction <add>, %25, %cst_22 [0] : vector<64x128xf32> to vector<128xf32>
    %27 = vector.shape_cast %26 : vector<128xf32> to vector<1x128xf32>
    %28 = vector.broadcast %23 : vector<1x1xf32> to vector<1x128xf32>
    %29 = arith.addf %27, %28 : vector<1x128xf32>
    %cst_23 = arith.constant 0.000000e+00 : f32
    %30 = vector.broadcast %cst_23 : f32 to vector<1x128xf32>
    %31 = arith.subf %30, %29 : vector<1x128xf32>
    %32 = math.exp %31 : vector<1x128xf32>
    %cst_24 = arith.constant 1.000000e+00 : f32
    %33 = vector.broadcast %cst_24 : f32 to vector<1x128xf32>
    %34 = arith.addf %33, %32 : vector<1x128xf32>
    %cst_25 = arith.constant 1.000000e+00 : f32
    %35 = vector.broadcast %cst_25 : f32 to vector<1x128xf32>
    %36 = arith.divf %35, %34 : vector<1x128xf32>
    %c0_26 = arith.constant 0 : index
    %c0_27 = arith.constant 0 : index
    %37 = vector.load %arg10[%c0_26, %c0_27] : memref<1x128xf32, #tpu.memory_space<vmem>>, vector<1x128xf32>
    tpu.vector_store %arg10[%c0_26, %c0_27], %36 {strides = array<i32>} : memref<1x128xf32, #tpu.memory_space<vmem>>, vector<1x128xf32>,
    return
  }
  func.func @transform_0(%arg0: i32) -> (i32, i32) {
    %c0_i32 = arith.constant 0 : i32
    %c0_i32_0 = arith.constant 0 : i32
    return %arg0, %c0_i32 : i32, i32
  }
  func.func @transform_1(%arg0: i32) -> (i32, i32) {
    %c0_i32 = arith.constant 0 : i32
    %c0_i32_0 = arith.constant 0 : i32
    %c0_i32_1 = arith.constant 0 : i32
    return %c0_i32, %c0_i32_0 : i32, i32
  }
  func.func @transform_2(%arg0: i32) -> (i32, i32) {
    %c0_i32 = arith.constant 0 : i32
    %c0_i32_0 = arith.constant 0 : i32
    %c0_i32_1 = arith.constant 0 : i32
    return %c0_i32, %c0_i32_0 : i32, i32
  }
  func.func @transform_3(%arg0: i32) -> (i32, i32) {
    %c0_i32 = arith.constant 0 : i32
    %c0_i32_0 = arith.constant 0 : i32
    %c0_i32_1 = arith.constant 0 : i32
    return %c0_i32, %c0_i32_0 : i32, i32
  }
  func.func @transform_4(%arg0: i32) -> (i32, i32) {
    %c0_i32 = arith.constant 0 : i32
    %c0_i32_0 = arith.constant 0 : i32
    %c0_i32_1 = arith.constant 0 : i32
    return %c0_i32, %c0_i32_0 : i32, i32
  }
  func.func @transform_5(%arg0: i32) -> (i32, i32) {
    %c0_i32 = arith.constant 0 : i32
    %c0_i32_0 = arith.constant 0 : i32
    %c0_i32_1 = arith.constant 0 : i32
    return %c0_i32, %c0_i32_0 : i32, i32
  }
  func.func @transform_6(%arg0: i32) -> (i32, i32) {
    %c0_i32 = arith.constant 0 : i32
    %c0_i32_0 = arith.constant 0 : i32
    %c0_i32_1 = arith.constant 0 : i32
    return %c0_i32, %c0_i32_0 : i32, i32
  }
  func.func @transform_7(%arg0: i32) -> (i32, i32) {
    %c0_i32 = arith.constant 0 : i32
    %c0_i32_0 = arith.constant 0 : i32
    %c0_i32_1 = arith.constant 0 : i32
    return %c0_i32, %c0_i32_0 : i32, i32
  }
  func.func @transform_8(%arg0: i32) -> (i32, i32) {
    %c0_i32 = arith.constant 0 : i32
    %c0_i32_0 = arith.constant 0 : i32
    %c0_i32_1 = arith.constant 0 : i32
    return %c0_i32, %c0_i32_0 : i32, i32
  }
  func.func @transform_9(%arg0: i32) -> (i32, i32) {
    %c0_i32 = arith.constant 0 : i32
    %c0_i32_0 = arith.constant 0 : i32
    return %c0_i32, %arg0 : i32, i32
  }
}

</mosaic_0001>

<bundles_post_ra>
// kernel: tpu_custom_call.1
= control target key start
LH: loop header
LB: loop body
LE: loop exit
PB: predicated region body
PF: predicated region fallthrough
CT: control target
= control target key end

     0   :  { %s1434_s0 = inlined_call_operand.vmem [shape: f32[128,32], index: 0, kind: input, shape index: {}]   ;;  %s1435_s1 = inlined_call_operand.vmem [shape: f32[64,32], index: 1, kind: input, shape index: {}]   ;;  %s1436_s2 = inlined_call_operand.vmem [shape: f32[64,1], index: 2, kind: input, shape index: {}]   ;;  %s1437_s3 = inlined_call_operand.vmem [shape: f32[64,64], index: 3, kind: input, shape index: {}]   ;;  %s1438_s4 = inlined_call_operand.vmem [shape: f32[64,1], index: 4, kind: input, shape index: {}]   ;;  %s1439_s5 = inlined_call_operand.vmem [shape: f32[64,64], index: 5, kind: input, shape index: {}]   ;;  %s1440_s6 = inlined_call_operand.vmem [shape: f32[64,1], index: 6, kind: input, shape index: {}]   ;;  %s1441_s7 = inlined_call_operand.vmem [shape: f32[64,1], index: 7, kind: input, shape index: {}]   ;;  %s1442_s8 = inlined_call_operand.<no memory space> [shape: f32[1,1], index: 8, kind: input, shape index: {}]   ;;  %s1443_s9 = inlined_call_operand.hbm [shape: f32[1,128], index: 9, kind: output, shape index: {}]  }
   0x1   :  { %v14_v0 = vstv %s1442_s8 }
   0x2   :  { %15 = vst [vmem:[#allocation2] sm:$0x1] %v14_v0 }
   0x3   :  { %v51_v1 = vld [vmem:[%s1434_s0] sm:$0xff]  ;;  %v52_v2 = vld [vmem:[%s1434_s0 + $0x8] sm:$0xff]  ;;  %vm107_vm0 = vcmask 261120   ;;  %v53_v3 = vld [vmem:[%s1434_s0 + $0x10] sm:$0xff]  ;;  %v1089_v7 = vmov 0  }
   0x4   :  { %v977_v4 = vpack.c.bf16 %v52_v2, %v51_v1  ;;  %vm1155_vm1 = vmpackc.low %vm107_vm0, %vm107_vm0  ;;  %v54_v6 = vld [vmem:[%s1434_s0 + $0x18] sm:$0xff]  ;;  %1059 = vset.pattern.permute.xlu0 %v1089_v7  ;;  %1060 = vset.pattern.permute.xlu1 %v1089_v7  ;;  %v35_v9 = vld [vmem:[%s1435_s1] sm:$0xff] }
   0x5   :  { %v983_v8 = vpack.c.bf16 %v54_v6, %v53_v3  ;;  %v55_v10 = vld [vmem:[%s1434_s0 + $0x20] sm:$0xff]  ;;  %v56_v11 = vld [vmem:[%s1434_s0 + $0x28] sm:$0xff]  ;;  %909 = vmatprep.mubr.msk.f32.mxu0 %vm107_vm0, %v35_v9  ;;  %v45_v14 = vld [vmem:[%s1436_s2 + $0x10] sm:$0xff] }
   0x6   :  { %979 = vmatprep.subr.msk.bf16.mxu0 %vm1155_vm1, %v977_v4  ;;  %v43_v12 = vld [vmem:[%s1436_s2] sm:$0xff]  ;;  %v989_v13 = vpack.c.bf16 %v56_v11, %v55_v10  ;;  %v44_v15 = vld [vmem:[%s1436_s2 + $0x8] sm:$0xff]  ;;  %79 = vperm.xlu1 %1060, %v45_v14   ;;  %v46_v16 = vld [vmem:[%s1436_s2 + $0x18] sm:$0xff] }
   0x7   :  { %982 = vmatpush3.bf16.xpose.msk.msra.mxu0 %vm1155_vm1, %v977_v4  ;;  %69 = vperm.xlu0 %1059, %v43_v12   ;;  %v57_v17 = vld [vmem:[%s1434_s0 + $0x30] sm:$0xff]  ;;  %v58_v18 = vld [vmem:[%s1434_s0 + $0x38] sm:$0xff]  ;;  %v47_v19 = vld [vmem:[%s1436_s2 + $0x20] sm:$0xff] }
   0x8   :  { %985 = vmatprep.subr.msk.bf16.mxu0 %vm1155_vm1, %v983_v8  ;;  %v48_v20 = vld [vmem:[%s1436_s2 + $0x28] sm:$0xff]  ;;  %v995_v21 = vpack.c.bf16 %v58_v18, %v57_v17  ;;  %v49_v22 = vld [vmem:[%s1436_s2 + $0x30] sm:$0xff]  ;;  %v50_v23 = vld [vmem:[%s1436_s2 + $0x38] sm:$0xff] }
   0xa   :  { %84 = vperm.xlu1 %1060, %v46_v16  }
   0xb   :  { %74 = vperm.xlu0 %1059, %v44_v15  }
   0xe   :  { %94 = vperm.xlu1 %1060, %v48_v20  }
   0xf   :  { %988 = vmatpush3.bf16.xpose.msk.msra.mxu0 %vm1155_vm1, %v983_v8  ;;  %89 = vperm.xlu0 %1059, %v47_v19  }
  0x10   :  { %991 = vmatprep.subr.msk.bf16.mxu0 %vm1155_vm1, %v989_v13 }
  0x11   :  { %16 = vsyncpa [#allocation4], 0  ;;  %v59_v24 = vld [vmem:[%s1434_s0 + $0x40] sm:$0xff]  ;;  %v60_v25 = vld [vmem:[%s1434_s0 + $0x48] sm:$0xff]  ;;  %vm349_vm2 = vcmask 523264  }
  0x12   :  { %v301_v26 = vld [vmem:[%s1438_s4] sm:$0xff]  ;;  %104 = vperm.xlu1 %1060, %v50_v23   ;;  %v302_v27 = vld [vmem:[%s1438_s4 + $0x8] sm:$0xff]  ;;  %v1001_v28 = vpack.c.bf16 %v60_v25, %v59_v24  ;;  %v303_v29 = vld [vmem:[%s1438_s4 + $0x10] sm:$0xff] }
  0x13   :  { %99 = vperm.xlu0 %1059, %v49_v22   ;;  %v304_v30 = vld [vmem:[%s1438_s4 + $0x18] sm:$0xff]  ;;  %v61_v31 = vld [vmem:[%s1434_s0 + $0x50] sm:$0xff]  ;;  %v305_v33 = vld [vmem:[%s1438_s4 + $0x20] sm:$0xff] }
  0x14   :  { %v62_v32 = vld [vmem:[%s1434_s0 + $0x58] sm:$0xff]  ;;  %v306_v34 = vld [vmem:[%s1438_s4 + $0x28] sm:$0xff]  ;;  %v307_v36 = vld [vmem:[%s1438_s4 + $0x30] sm:$0xff] }
  0x15   :  { %v1007_v35 = vpack.c.bf16 %v62_v32, %v61_v31  ;;  %v308_v37 = vld [vmem:[%s1438_s4 + $0x38] sm:$0xff]  ;;  %v63_v38 = vld [vmem:[%s1434_s0 + $0x60] sm:$0xff]  ;;  %v64_v39 = vld [vmem:[%s1434_s0 + $0x68] sm:$0xff] }
  0x16   :  { %316 = vperm.xlu1 %1060, %v302_v27   ;;  %v495_v40 = vld [vmem:[%s1440_s6] sm:$0xff]  ;;  %v496_v41 = vld [vmem:[%s1440_s6 + $0x8] sm:$0xff]  ;;  %v1013_v42 = vpack.c.bf16 %v64_v39, %v63_v38  ;;  %v497_v43 = vld [vmem:[%s1440_s6 + $0x10] sm:$0xff] }
  0x17   :  { %994 = vmatpush3.bf16.xpose.msk.msra.mxu0 %vm1155_vm1, %v989_v13  ;;  %311 = vperm.xlu0 %1059, %v301_v26   ;;  %v498_v44 = vld [vmem:[%s1440_s6 + $0x18] sm:$0xff]  ;;  %v65_v45 = vld [vmem:[%s1434_s0 + $0x70] sm:$0xff]  ;;  %v680_v47 = vld [vmem:[%s1441_s7] sm:$0xff] }
  0x18   :  { %997 = vmatprep.subr.msk.bf16.mxu0 %vm1155_vm1, %v995_v21  ;;  %v66_v46 = vld [vmem:[%s1434_s0 + $0x78] sm:$0xff]  ;;  %v681_v48 = vld [vmem:[%s1441_s7 + $0x8] sm:$0xff]  ;;  %v499_v50 = vld [vmem:[%s1440_s6 + $0x20] sm:$0xff] }
  0x19   :  { %v1019_v49 = vpack.c.bf16 %v66_v46, %v65_v45  ;;  %v682_v51 = vld [vmem:[%s1441_s7 + $0x10] sm:$0xff]  ;;  %v500_v52 = vld [vmem:[%s1440_s6 + $0x28] sm:$0xff]  ;;  %v683_v53 = vld [vmem:[%s1441_s7 + $0x18] sm:$0xff] }
  0x1a   :  { %326 = vperm.xlu1 %1060, %v304_v30   ;;  %v501_v54 = vld [vmem:[%s1440_s6 + $0x30] sm:$0xff]  ;;  %v684_v55 = vld [vmem:[%s1441_s7 + $0x20] sm:$0xff]  ;;  %v502_v56 = vld [vmem:[%s1440_s6 + $0x38] sm:$0xff] }
  0x1b   :  { %321 = vperm.xlu0 %1059, %v303_v29   ;;  %v685_v57 = vld [vmem:[%s1441_s7 + $0x28] sm:$0xff]  ;;  %v37_v59 = vld [vmem:[%s1435_s1 + $0x10] sm:$0xff]  ;;  %v687_v61 = vld [vmem:[%s1441_s7 + $0x38] sm:$0xff] }
  0x1c   :  { %v36_v58 = vld [vmem:[%s1435_s1 + $0x8] sm:$0xff]  ;;  %v686_v60 = vld [vmem:[%s1441_s7 + $0x30] sm:$0xff]  ;;  %v38_v62 = vld [vmem:[%s1435_s1 + $0x18] sm:$0xff] }
  0x1d   :  { %v39_v63 = vld [vmem:[%s1435_s1 + $0x20] sm:$0xff]  ;;  %v40_v1 = vld [vmem:[%s1435_s1 + $0x28] sm:$0xff]  ;;  %v41_v2 = vld [vmem:[%s1435_s1 + $0x30] sm:$0xff] }
  0x1e   :  { %336 = vperm.xlu1 %1060, %v306_v34   ;;  %v688_v0 = vld [vmem:[#allocation2] sm:$0x1]  ;;  %v42_v3 = vld [vmem:[%s1435_s1 + $0x38] sm:$0xff]  ;;  %v298_v45 = vld [vmem:[%s1437_s3 + $0x28] sm:$0xff] }
  0x1f   :  { %1000 = vmatpush3.bf16.xpose.msk.msra.mxu0 %vm1155_vm1, %v995_v21  ;;  %331 = vperm.xlu0 %1059, %v305_v33   ;;  %v293_v4 = vld [vmem:[%s1437_s3] sm:$0xff]  ;;  %v299_v46 = vld [vmem:[%s1437_s3 + $0x30] sm:$0xff] }
  0x20   :  { %1003 = vmatprep.subr.msk.bf16.mxu0 %vm1155_vm1, %v1001_v28  ;;  %937 = vmatprep.mubr.msk.f32.mxu1 %vm349_vm2, %v293_v4 }
  0x22   :  { %346 = vperm.xlu1 %1060, %v308_v37  }
  0x23   :  { %341 = vperm.xlu0 %1059, %v307_v36  }
  0x26   :  { %510 = vperm.xlu1 %1060, %v496_v41   ;;  %v294_v41 = vld [vmem:[%s1437_s3 + $0x8] sm:$0xff] }
  0x27   :  { %1006 = vmatpush3.bf16.xpose.msk.msra.mxu0 %vm1155_vm1, %v1001_v28  ;;  %505 = vperm.xlu0 %1059, %v495_v40  }
  0x28   :  { %1009 = vmatprep.subr.msk.bf16.mxu0 %vm1155_vm1, %v1007_v35 }
  0x2a   :  { %520 = vperm.xlu1 %1060, %v498_v44   ;;  %v297_v44 = vld [vmem:[%s1437_s3 + $0x20] sm:$0xff] }
  0x2b   :  { %515 = vperm.xlu0 %1059, %v497_v43   ;;  %v296_v43 = vld [vmem:[%s1437_s3 + $0x18] sm:$0xff] }
  0x2e   :  { %696 = vperm.xlu1 %1060, %v681_v48   ;;  %v487_v48 = vld [vmem:[%s1439_s5] sm:$0xff] }
  0x2f   :  { %1012 = vmatpush3.bf16.xpose.msk.msra.mxu0 %vm1155_vm1, %v1007_v35  ;;  %691 = vperm.xlu0 %1059, %v680_v47   ;;  %v300_v47 = vld [vmem:[%s1437_s3 + $0x38] sm:$0xff] }
  0x30   :  { %1015 = vmatprep.subr.msk.bf16.mxu0 %vm1155_vm1, %v1013_v42 }
  0x32   :  { %701 = vperm.xlu1 %1060, %v682_v51  }
  0x33   :  { %525 = vperm.xlu0 %1059, %v499_v50  }
  0x36   :  { %706 = vperm.xlu1 %1060, %v683_v53  }
  0x37   :  { %1018 = vmatpush3.bf16.xpose.msk.msra.mxu0 %vm1155_vm1, %v1013_v42  ;;  %530 = vperm.xlu0 %1059, %v500_v52   ;;  %v295_v42 = vld [vmem:[%s1437_s3 + $0x10] sm:$0xff] }
  0x38   :  { %1021 = vmatprep.subr.msk.bf16.mxu0 %vm1155_vm1, %v1019_v49 }
  0x3a   :  { %711 = vperm.xlu1 %1060, %v684_v55  }
  0x3b   :  { %535 = vperm.xlu0 %1059, %v501_v54  }
  0x3e   :  { %716 = vperm.xlu1 %1060, %v685_v57  }
  0x3f   :  { %1024 = vmatpush3.bf16.xpose.msk.msra.mxu0 %vm1155_vm1, %v1019_v49  ;;  %540 = vperm.xlu0 %1059, %v502_v56  }
  0x42   :  { %726 = vperm.xlu1 %1060, %v687_v61  }
  0x43   :  { %721 = vperm.xlu0 %1059, %v686_v60  }
  0x46   :  { %910 = vmatmul.mubr.msk.f32.vlgmr.msra.gmra.mrb[0].mxu0 %vm107_vm0, %v36_v58 }
  0x47   :  { %912 = vmatprep.mubr.msk.f32.mxu0 %vm107_vm0, %v37_v59  ;;  %752 = vperm.xlu0 %1059, %v688_v0  }
  0x4a   :  { %913 = vmatmul.mubr.msk.f32.gmra.mrb[2].mxu0 %vm107_vm0, %v38_v62 }
  0x4b   :  { %915 = vmatprep.mubr.msk.f32.mxu0 %vm107_vm0, %v39_v63 }
  0x4e   :  { %916 = vmatmul.mubr.msk.f32.gmra.mrb[4].mxu0 %vm107_vm0, %v40_v1 }
  0x4f   :  { %918 = vmatprep.mubr.msk.f32.mxu0 %vm107_vm0, %v41_v2 }
  0x52   :  { %919 = vmatmul.mubr.msk.f32.gmra.mrb[6].mxu0 %vm107_vm0, %v42_v3 }
  0x85   :  { %v80_v6 = vpop.permute.xlu1 %79 }
  0x86   :  { %v70_v5 = vpop.permute.xlu0 %69 }
  0x89   :  { %v85_v8 = vpop.permute.xlu1 %84 }
  0x8a   :  { %v75_v7 = vpop.permute.xlu0 %74 }
  0x8d   :  { %v95_v18 = vpop.permute.xlu1 %94 }
  0x8e   :  { %v90_v21 = vpop.permute.xlu0 %89 }
  0x91   :  { %v105_v30 = vpop.permute.xlu1 %104 }
  0x92   :  { %v100_v33 = vpop.permute.xlu0 %99 }
  0x95   :  { %v317_v49 = vpop.permute.xlu1 %316 }
  0x96   :  { %v312_v50 = vpop.permute.xlu0 %311 }
  0x99   :  { %v327_v51 = vpop.permute.xlu1 %326 }
  0x9a   :  { %v322_v53 = vpop.permute.xlu0 %321 }
  0x9d   :  { %v337_v62 = vpop.permute.xlu1 %336 }
  0x9e   :  { %v332_v1 = vpop.permute.xlu0 %331 }
 0x119   :  { %v911_v9 = vpop.f32.mrb[0].mxu0 }
 0x11a   :  { %v252_v10 = vadd.f32 %v911_v9, %v75_v7  ;;  %v246_v11 = vpop.f32.mrb[1].mxu0 }
 0x11b   :  { %v247_v12 = vadd.f32 %v246_v11, %v70_v5 }
 0x11c   :  { %v286_v13 = vmax.f32 %v252_v10, 0.0  ;;  %v347_v10 = vpop.permute.xlu1 %346 }
 0x11d   :  { %v285_v14 = vmax.f32 %v247_v12, 0.0  ;;  %v914_v15 = vpop.f32.mrb[2].mxu0 }
 0x11e   :  { %v262_v16 = vadd.f32 %v914_v15, %v85_v8  ;;  %v256_v17 = vpop.f32.mrb[3].mxu0 }
 0x11f   :  { %v257_v19 = vadd.f32 %v256_v17, %v80_v6  ;;  %v1025_v20 = vpack.c.bf16 %v286_v13, %v285_v14  ;;  %v342_v13 = vpop.permute.xlu0 %341 }
 0x120   :  { %v288_v22 = vmax.f32 %v262_v16, 0.0 }
 0x121   :  { %v287_v23 = vmax.f32 %v257_v19, 0.0  ;;  %v917_v24 = vpop.f32.mrb[4].mxu0  ;;  %1026 = vmatprep.subr.bf16.mxu1 %v1025_v20 }
 0x122   :  { %v272_v25 = vadd.f32 %v917_v24, %v95_v18  ;;  %v266_v26 = vpop.f32.mrb[5].mxu0  ;;  %1028 = vmatpush3.bf16.msra.mxu1 %v1025_v20  ;;  %v491_v24 = vld [vmem:[%s1439_s5 + $0x20] sm:$0xff] }
 0x123   :  { %v1029_v27 = vpack.c.bf16 %v288_v22, %v287_v23  ;;  %v267_v28 = vadd.f32 %v266_v26, %v90_v21  ;;  %v488_v21 = vld [vmem:[%s1439_s5 + $0x8] sm:$0xff]  ;;  %v489_v22 = vld [vmem:[%s1439_s5 + $0x10] sm:$0xff]  ;;  %v490_v23 = vld [vmem:[%s1439_s5 + $0x18] sm:$0xff] }
 0x124   :  { %v290_v29 = vmax.f32 %v272_v25, 0.0  ;;  %v492_v25 = vld [vmem:[%s1439_s5 + $0x28] sm:$0xff]  ;;  %v493_v26 = vld [vmem:[%s1439_s5 + $0x30] sm:$0xff] }
 0x125   :  { %v289_v31 = vmax.f32 %v267_v28, 0.0  ;;  %v920_v32 = vpop.f32.mrb[6].mxu0  ;;  %1030 = vmatprep.subr.bf16.mxu1 %v1029_v27  ;;  %v506_v28 = vpop.permute.xlu0 %505 }
 0x126   :  { %v282_v34 = vadd.f32 %v920_v32, %v105_v30  ;;  %v276_v35 = vpop.f32.mrb[7].mxu0  ;;  %1032 = vmatpush3.bf16.msra.mxu1 %v1029_v27  ;;  %v494_v27 = vld [vmem:[%s1439_s5 + $0x38] sm:$0xff]  ;;  %s1090_s5 = smov [#allocation3]  }
 0x127   :  { %v1033_v36 = vpack.c.bf16 %v290_v29, %v289_v31  ;;  %v277_v37 = vadd.f32 %v276_v35, %v100_v33  ;;  %v511_v29 = vpop.permute.xlu1 %510  ;;  %s773_s27 = sshll.u32 %s1090_s5, 4  ;;  %s774_s27 = int_to_ptr.vmem [resolvable:$true] %s773_s27 }
 0x128   :  { %v292_v38 = vmax.f32 %v282_v34, 0.0  ;;  %s1065_s2 = scalar_lea.vmem %s774_s27, 16  ;;  %s1069_s4 = scalar_lea.vmem %s774_s27, 32 }
 0x129   :  { %v291_v39 = vmax.f32 %v277_v37, 0.0  ;;  %1034 = vmatprep.subr.bf16.mxu1 %v1033_v36  ;;  %v516_v30 = vpop.permute.xlu0 %515  ;;  %p1066_p0 = scmp.ne.s32.totalorder %s774_s27, %s1065_s2  ;;  %p1070_p1 = scmp.lt.s32.totalorder %s774_s27, %s774_s27 }
 0x12a   :  { %1036 = vmatpush3.bf16.msra.mxu1 %v1033_v36  ;;  %p1071_p2 = scmp.lt.s32.totalorder %s1069_s4, %s1065_s2 }
 0x12b   :  { %v1037_v40 = vpack.c.bf16 %v292_v38, %v291_v39  ;;  %v521_v31 = vpop.permute.xlu1 %520 }
 0x12c   :  { %p1072_p3 = por %p1071_p2, %p1070_p1 }
 0x12d   :  { %1038 = vmatprep.subr.bf16.mxu1 %v1037_v40  ;;  %v692_v32 = vpop.permute.xlu0 %691 }
 0x12e   :  { %1040 = vmatpush3.bf16.msra.mxu1 %v1037_v40  ;;  %p1073_p4 = pnand %p1072_p3, %p1066_p0 }
 0x12f   :  { %v697_v33 = vpop.permute.xlu1 %696 }
 0x131   :  { %938 = vmatmul.mubr.msk.f32.vlgmr.msra.gmra.mrb[0].mxu1 %vm349_vm2, %v294_v41  ;;  %v526_v34 = vpop.permute.xlu0 %525 }
 0x132   :  { %940 = vmatprep.mubr.msk.f32.mxu1 %vm349_vm2, %v295_v42 }
 0x133   :  { %v702_v35 = vpop.permute.xlu1 %701 }
 0x135   :  { %941 = vmatmul.mubr.msk.f32.gmra.mrb[2].mxu1 %vm349_vm2, %v296_v43  ;;  %v531_v36 = vpop.permute.xlu0 %530 }
 0x136   :  { %943 = vmatprep.mubr.msk.f32.mxu1 %vm349_vm2, %v297_v44 }
 0x137   :  { %v707_v38 = vpop.permute.xlu1 %706 }
 0x139   :  { %944 = vmatmul.mubr.msk.f32.gmra.mrb[4].mxu1 %vm349_vm2, %v298_v45  ;;  %v536_v45 = vpop.permute.xlu0 %535 }
 0x13a   :  { %946 = vmatprep.mubr.msk.f32.mxu1 %vm349_vm2, %v299_v46 }
 0x13d   :  { %947 = vmatmul.mubr.msk.f32.gmra.mrb[6].mxu1 %vm349_vm2, %v300_v47 }
 0x13e   :  { %965 = vmatprep.mubr.msk.f32.mxu1 %vm349_vm2, %v487_v48 }
 0x204   :  { %v939_v52 = vpop.f32.mrb[0].mxu1 }
 0x205   :  { %v446_v54 = vadd.f32 %v939_v52, %v317_v49  ;;  %v440_v55 = vpop.f32.mrb[1].mxu1 }
 0x206   :  { %v441_v56 = vadd.f32 %v440_v55, %v312_v50 }
 0x207   :  { %v480_v57 = vmax.f32 %v446_v54, 0.0 }
 0x208   :  { %v479_v58 = vmax.f32 %v441_v56, 0.0  ;;  %v942_v59 = vpop.f32.mrb[2].mxu1 }
 0x209   :  { %v456_v60 = vadd.f32 %v942_v59, %v327_v51  ;;  %v450_v61 = vpop.f32.mrb[3].mxu1  ;;  %v712_v51 = vpop.permute.xlu1 %711 }
 0x20a   :  { %v1041_v63 = vpack.c.bf16 %v480_v57, %v479_v58  ;;  %v451_v0 = vadd.f32 %v450_v61, %v322_v53 }
 0x20b   :  { %v482_v2 = vmax.f32 %v456_v60, 0.0  ;;  %v541_v60 = vpop.permute.xlu0 %540 }
 0x20c   :  { %v481_v3 = vmax.f32 %v451_v0, 0.0  ;;  %v945_v4 = vpop.f32.mrb[4].mxu1  ;;  %1042 = vmatprep.subr.bf16.mxu1 %v1041_v63 }
 0x20d   :  { %v466_v5 = vadd.f32 %v945_v4, %v337_v62  ;;  %v460_v6 = vpop.f32.mrb[5].mxu1  ;;  %1044 = vmatpush3.bf16.msra.mxu1 %v1041_v63 }
 0x20e   :  { %v1045_v7 = vpack.c.bf16 %v482_v2, %v481_v3  ;;  %v461_v8 = vadd.f32 %v460_v6, %v332_v1  ;;  %v717_v2 = vpop.permute.xlu1 %716 }
 0x20f   :  { %v484_v9 = vmax.f32 %v466_v5, 0.0 }
 0x210   :  { %v483_v11 = vmax.f32 %v461_v8, 0.0  ;;  %v948_v12 = vpop.f32.mrb[6].mxu1  ;;  %1046 = vmatprep.subr.bf16.mxu1 %v1045_v7 }
 0x211   :  { %v476_v14 = vadd.f32 %v948_v12, %v347_v10  ;;  %v470_v15 = vpop.f32.mrb[7].mxu1  ;;  %1048 = vmatpush3.bf16.msra.mxu1 %v1045_v7  ;;  %v722_v12 = vpop.permute.xlu0 %721 }
 0x212   :  { %v1049_v16 = vpack.c.bf16 %v484_v9, %v483_v11  ;;  %v471_v17 = vadd.f32 %v470_v15, %v342_v13  ;;  %v727_v15 = vpop.permute.xlu1 %726 }
 0x213   :  { %v486_v18 = vmax.f32 %v476_v14, 0.0 }
 0x214   :  { %v485_v19 = vmax.f32 %v471_v17, 0.0  ;;  %1050 = vmatprep.subr.bf16.mxu1 %v1049_v16 }
 0x215   :  { %1052 = vmatpush3.bf16.msra.mxu1 %v1049_v16 }
 0x216   :  { %v1053_v20 = vpack.c.bf16 %v486_v18, %v485_v19  ;;  %v755_v18 = vlaneseq }
 0x218   :  { %1054 = vmatprep.subr.bf16.mxu1 %v1053_v20 }
 0x219   :  { %1056 = vmatpush3.bf16.msra.mxu1 %v1053_v20 }
 0x21c   :  { %966 = vmatmul.mubr.msk.f32.vlgmr.msra.gmra.mrb[8].mxu1 %vm349_vm2, %v488_v21  ;;  %v756_v21 = vshrl.u32 %v755_v18, 7 }
 0x21d   :  { %968 = vmatprep.mubr.msk.f32.mxu1 %vm349_vm2, %v489_v22 }
 0x220   :  { %969 = vmatmul.mubr.msk.f32.gmra.mrb[10].mxu1 %vm349_vm2, %v490_v23 }
 0x221   :  { %971 = vmatprep.mubr.msk.f32.mxu1 %vm349_vm2, %v491_v24  ;;  %v757_v24 = vsub.s32 0, %v756_v21 }
 0x224   :  { %972 = vmatmul.mubr.msk.f32.gmra.mrb[12].mxu1 %vm349_vm2, %v492_v25 }
 0x225   :  { %974 = vmatprep.mubr.msk.f32.mxu1 %vm349_vm2, %v493_v26  ;;  %v753_v26 = vpop.permute.xlu0 %752 }
 0x228   :  { %975 = vmatmul.mubr.msk.f32.gmra.mrb[14].mxu1 %vm349_vm2, %v494_v27 }
 0x2ef   :  { %v967_v37 = vpop.f32.mrb[8].mxu1 }
 0x2f0   :  { %v639_v39 = vadd.f32 %v967_v37, %v511_v29  ;;  %v633_v40 = vpop.f32.mrb[9].mxu1 }
 0x2f1   :  { %v634_v41 = vadd.f32 %v633_v40, %v506_v28  ;;  %v758_v28 = vrot.slane %v753_v26, %v757_v24 }
 0x2f2   :  { %v673_v42 = vmax.f32 %v639_v39, 0.0 }
 0x2f3   :  { %v672_v43 = vmax.f32 %v634_v41, 0.0  ;;  %v970_v44 = vpop.f32.mrb[10].mxu1 }
 0x2f4   :  { %v730_v46 = vmul.f32 %v697_v33, %v673_v42  ;;  %v649_v47 = vadd.f32 %v970_v44, %v521_v31  ;;  %v643_v48 = vpop.f32.mrb[11].mxu1 }
 0x2f5   :  { %v729_v49 = vmul.f32 %v692_v32, %v672_v43  ;;  %v644_v50 = vadd.f32 %v643_v48, %v516_v30 }
 0x2f6   :  { %v675_v53 = vmax.f32 %v649_v47, 0.0 }
 0x2f7   :  { %v737_v52 = vadd.f32 %v730_v46, %v729_v49  ;;  %v674_v54 = vmax.f32 %v644_v50, 0.0  ;;  %v973_v55 = vpop.f32.mrb[12].mxu1 }
 0x2f8   :  { %v659_v56 = vadd.f32 %v973_v55, %v531_v36  ;;  %v653_v57 = vpop.f32.mrb[13].mxu1  ;;  %v732_v61 = vmul.f32 %v707_v38, %v675_v53 }
 0x2f9   :  { %v731_v58 = vmul.f32 %v702_v35, %v674_v54  ;;  %v654_v59 = vadd.f32 %v653_v57, %v526_v34 }
 0x2fa   :  { %v677_v63 = vmax.f32 %v659_v56, 0.0 }
 0x2fb   :  { %v738_v62 = vadd.f32 %v737_v52, %v731_v58  ;;  %v676_v0 = vmax.f32 %v654_v59, 0.0  ;;  %v976_v1 = vpop.f32.mrb[14].mxu1 }
 0x2fc   :  { %v669_v3 = vadd.f32 %v976_v1, %v541_v60  ;;  %v663_v4 = vpop.f32.mrb[15].mxu1  ;;  %v734_v8 = vmul.f32 %v717_v2, %v677_v63 }
 0x2fd   :  { %v733_v5 = vmul.f32 %v712_v51, %v676_v0  ;;  %v739_v6 = vadd.f32 %v738_v62, %v732_v61  ;;  %v664_v7 = vadd.f32 %v663_v4, %v536_v45 }
 0x2fe   :  { %v679_v10 = vmax.f32 %v669_v3, 0.0 }
 0x2ff   :  { %v740_v9 = vadd.f32 %v739_v6, %v733_v5  ;;  %v678_v11 = vmax.f32 %v664_v7, 0.0 }
 0x300   :  { %v736_v16 = vmul.f32 %v727_v15, %v679_v10 }
 0x301   :  { %v735_v13 = vmul.f32 %v722_v12, %v678_v11  ;;  %v741_v14 = vadd.f32 %v740_v9, %v734_v8 }
 0x303   :  { %v742_v17 = vadd.f32 %v741_v14, %v735_v13 }
 0x305   :  { %v743_v19 = vadd.f32 %v742_v17, %v736_v16 }
 0x307   :  { %v744_v20 = vrot.slane %v743_v19, 4 }
 0x309   :  { %v745_v22 = vadd.f32 %v744_v20, %v743_v19 }
 0x30b   :  { %v746_v23 = vrot.slane %v745_v22, 2 }
 0x30d   :  { %v747_v25 = vadd.f32 %v746_v23, %v745_v22 }
 0x30f   :  { %v748_v27 = vrot.slane %v747_v25, 1 }
 0x311   :  { %v749_v29 = vadd.f32 %v748_v27, %v747_v25 }
 0x313   :  { %v759_v30 = vadd.f32 %v758_v28, %v749_v29 }
 0x315   :  { %v760_v31 = vsub.f32 0.0, %v759_v30 }
 0x317   :  { %v761_v32 = vmul.f32 1.442695, %v760_v31 }
 0x319   :  { %1061 = vpow2.f32 %v761_v32 }
 0x323   :  { %v1062_v33 = vpop.eup %1061 }
 0x324   :  { %v763_v34 = vadd.f32 1.0, %v1062_v33 }
 0x326   :  { %1063 = vrcp.f32 %v763_v34 }
 0x330   :  { %v1064_v35 = vpop.eup %1063 }
 0x331   :  { %766 = vst [vmem:[#allocation3] sm:$0x1] %v1064_v35 }
 0x332   :  { %1076 = shalt.err (!%p1073_p4)
}
 0x333   :  { %s1077_s30 = scalar_lea.hbm %s1443_s9, 16 }
 0x334   :  { %p1078_p5 = scmp.ne.s32.totalorder %s1443_s9, %s1077_s30  ;;  %p1081_p6 = scmp.lt.u32.totalorder %s1077_s30, %s1443_s9 }
 0x336   :  { %p1083_p7 = pnand %p1081_p6, %p1078_p5 }
 0x338   :  { %1086 = shalt.err (!%p1083_p7)
}
 0x339   :  { %776 = dma.vmem_to_hbm [thread:$0]  %s774_s27, 16, %s1443_s9, [#allocation4]  }
 0x33a   :  { %1087 = dma.done.wait [#allocation4], 16  }
 0x33b   :  { %1088 = vsyncadd [#allocation4], 4294967280 }
 0x33c   :  { %780 = vsyncpa [#allocation4], 1 }

</bundles_post_ra>
